<compile_context>
chip_gen: v7x
topology: tpu7x:2x2x1
jax: 0.10.0
libtpu: 0.0.40
codegen_flags: <defaults>
</compile_context>

<pallas_src>
import functools

import jax
import jax.numpy as jnp
from jax.experimental import pallas as pl
from jax.experimental.pallas import tpu as pltpu


def _line_kernel(vi_idx_ref, vj_idx_ref, neg_idx_ref,   # scalar-prefetch (SMEM), unused in body
                 vi_ref, vj_ref, neg_ref,                # gathered rows (VMEM), each [1, 1, D]
                 out_ref,                                # [1, 1] f32 accumulator / result
                 *, batch):
    b = pl.program_id(0)
    k = pl.program_id(1)
    is_first = jnp.logical_and(b == 0, k == 0)
    is_last = jnp.logical_and(b == pl.num_programs(0) - 1,
                              k == pl.num_programs(1) - 1)

    @pl.when(is_first)
    def _():
        out_ref[...] = jnp.zeros_like(out_ref)

    vj = vj_ref[0]        # [1, D]  context embedding of v_j
    neg = neg_ref[0]      # [1, D]  context embedding of one negative sample

    # score = sum(vj * (-neg)); sign is folded into the reduced [1,1] scalar so
    # no negated [*, D] copy is ever materialized.
    neg_score = -jnp.sum(vj * neg, axis=-1, keepdims=True)               # [1, 1]
    # logsigmoid(x) = min(x, 0) - log1p(exp(-|x|))   (numerically stable)
    logsig = jnp.minimum(neg_score, 0.0) - jnp.log1p(jnp.exp(-jnp.abs(neg_score)))
    out_ref[...] += logsig

    # positive term contributes once per batch element (on the k == 0 step).
    @pl.when(k == 0)
    def _():
        vi = vi_ref[0]                                                   # [1, D]
        pos_score = jnp.sum(vi * vj, axis=-1, keepdims=True)             # [1, 1]
        positive = pl.reciprocal(1.0 + jnp.exp(-pos_score), approx=False)
        out_ref[...] += positive

    @pl.when(is_last)
    def _():
        out_ref[...] = out_ref[...] * (-1.0 / batch)


def line_forward(node_emb, ctx_emb, v_i, v_j, negative_samples):
    """node_emb, ctx_emb: [V, D].  v_i, v_j: [B] int32.  negative_samples: [B, K] int32."""
    B = v_i.shape[0]
    K = negative_samples.shape[1]
    V, D = node_emb.shape

    # View tables as [V, 1, D] so a (1, 1, D) gathered block's trailing dims
    # equal the array's trailing dims (layout-legal on TPU).
    node3 = node_emb.reshape(V, 1, D)
    ctx3 = ctx_emb.reshape(V, 1, D)

    grid_spec = pltpu.PrefetchScalarGridSpec(
        num_scalar_prefetch=3,
        grid=(B, K),
        in_specs=[
            # one row of node_embeddings for v_i[b]
            pl.BlockSpec((1, 1, D), lambda b, k, vi, vj, ns: (vi[b], 0, 0)),
            # one row of context_embeddings for v_j[b]
            pl.BlockSpec((1, 1, D), lambda b, k, vi, vj, ns: (vj[b], 0, 0)),
            # one row of context_embeddings for negative_samples[b, k]
            pl.BlockSpec((1, 1, D), lambda b, k, vi, vj, ns: (ns[b, k], 0, 0)),
        ],
        out_specs=pl.BlockSpec((1, 1), lambda b, k, vi, vj, ns: (0, 0)),
    )

    out = pl.pallas_call(
        functools.partial(_line_kernel, batch=B),
        out_shape=jax.ShapeDtypeStruct((1, 1), jnp.float32),
        grid_spec=grid_spec,
        compiler_params=pltpu.CompilerParams(
            dimension_semantics=("arbitrary", "arbitrary")),
    )(v_i, v_j, negative_samples, node3, ctx3, ctx3)
    return out[0, 0]


def line_reference(node_emb, ctx_emb, v_i, v_j, negative_samples):
    """Pure-JAX reference mirroring the PyTorch forward."""
    B, K = negative_samples.shape
    D = node_emb.shape[1]
    vi_emb = node_emb[v_i]
    vj_emb = ctx_emb[v_j]
    neg_emb = ctx_emb[negative_samples]
    positive = jax.nn.sigmoid(jnp.sum(vi_emb * vj_emb, axis=1))
    neg_mul = vj_emb.reshape(B, 1, D) * (-neg_emb)
    negative = jnp.sum(jax.nn.log_sigmoid(jnp.sum(neg_mul, axis=2)), axis=1)
    return -jnp.mean(negative + positive)


if __name__ == "__main__":
    embedding_dim = 32     # D
    embedding_size = 64    # V
    batch = 8              # B
    num_neg = 5            # K

    key = jax.random.PRNGKey(0)
    k_node, k_ctx, k_i, k_j, k_neg = jax.random.split(key, 5)

    # nn.Embedding default init: N(0, 1)
    node_emb = jax.random.normal(k_node, (embedding_size, embedding_dim), jnp.float32)
    ctx_emb = jax.random.normal(k_ctx, (embedding_size, embedding_dim), jnp.float32)

    v_i = jax.random.randint(k_i, (batch,), 0, embedding_size, jnp.int32)
    v_j = jax.random.randint(k_j, (batch,), 0, embedding_size, jnp.int32)
    negative_samples = jax.random.randint(
        k_neg, (batch, num_neg), 0, embedding_size, jnp.int32)

    loss = line_forward(node_emb, ctx_emb, v_i, v_j, negative_samples)
    loss = jax.block_until_ready(loss)

    ref = line_reference(node_emb, ctx_emb, v_i, v_j, negative_samples)
    assert jnp.allclose(loss, ref, rtol=1e-5, atol=1e-5), (loss, ref)

    print("KERNEL_OK")
</pallas_src>

<mosaic_0001>
module attributes {stable_mosaic.version = 11 : i64} {
  func.func @_line_kernel(%arg0: i32, %arg1: i32, %arg2: memref<8xi32, #tpu.memory_space<smem>>, %arg3: memref<8xi32, #tpu.memory_space<smem>>, %arg4: memref<8x5xi32, #tpu.memory_space<smem>>, %arg5: memref<1x1x32xf32, #tpu.memory_space<vmem>>, %arg6: memref<1x1x32xf32, #tpu.memory_space<vmem>>, %arg7: memref<1x1x32xf32, #tpu.memory_space<vmem>>, %arg8: memref<1x1xf32, #tpu.memory_space<vmem>>) attributes {dimension_semantics = [#tpu.dimension_semantics<arbitrary>, #tpu.dimension_semantics<arbitrary>], iteration_bounds = array<i64: 8, 5>, scalar_prefetch = 3 : i64, scratch_operands = 0 : i64, tpu.core_type = #tpu.core_type<tc>, window_params = [{transform_indices = @transform_0, window_bounds = array<i64: 1, 1, 32>}, {transform_indices = @transform_1, window_bounds = array<i64: 1, 1, 32>}, {transform_indices = @transform_2, window_bounds = array<i64: 1, 1, 32>}, {pipeline_mode = #tpu.pipeline_mode<synchronous>, transform_indices = @transform_3, window_bounds = array<i64: 1, 1>}]} {
    %c0_i32 = arith.constant 0 : i32
    %0 = arith.cmpi eq, %arg0, %c0_i32 : i32
    %c0_i32_0 = arith.constant 0 : i32
    %1 = arith.cmpi eq, %arg1, %c0_i32_0 : i32
    %2 = arith.andi %0, %1 : i1
    %c7_i32 = arith.constant 7 : i32
    %3 = arith.cmpi eq, %arg0, %c7_i32 : i32
    %c4_i32 = arith.constant 4 : i32
    %4 = arith.cmpi eq, %arg1, %c4_i32 : i32
    %5 = arith.andi %3, %4 : i1
    %6 = arith.extui %2 : i1 to i32
    %c0_i32_1 = arith.constant 0 : i32
    %7 = arith.cmpi ne, %6, %c0_i32_1 : i32
    scf.if %7 {
      %cst_17 = arith.constant 0.000000e+00 : f32
      %33 = vector.broadcast %cst_17 : f32 to vector<1x1xf32>
      %c0_18 = arith.constant 0 : index
      %c0_19 = arith.constant 0 : index
      %34 = vector.load %arg8[%c0_18, %c0_19] : memref<1x1xf32, #tpu.memory_space<vmem>>, vector<1x1xf32>
      tpu.vector_store %arg8[%c0_18, %c0_19], %33 {strides = array<i32>} : memref<1x1xf32, #tpu.memory_space<vmem>>, vector<1x1xf32>,
    } else {
    }
    %c0 = arith.constant 0 : index
    %c0_2 = arith.constant 0 : index
    %c0_3 = arith.constant 0 : index
    %8 = vector.load %arg6[%c0, %c0_2, %c0_3] : memref<1x1x32xf32, #tpu.memory_space<vmem>>, vector<1x1x32xf32>
    %9 = vector.shape_cast %8 : vector<1x1x32xf32> to vector<1x32xf32>
    %c0_4 = arith.constant 0 : index
    %c0_5 = arith.constant 0 : index
    %c0_6 = arith.constant 0 : index
    %10 = vector.load %arg7[%c0_4, %c0_5, %c0_6] : memref<1x1x32xf32, #tpu.memory_space<vmem>>, vector<1x1x32xf32>
    %11 = vector.shape_cast %10 : vector<1x1x32xf32> to vector<1x32xf32>
    %12 = arith.mulf %9, %11 : vector<1x32xf32>
    %cst = arith.constant dense<0.000000e+00> : vector<1xf32>
    %13 = vector.multi_reduction <add>, %12, %cst [1] : vector<1x32xf32> to vector<1xf32>
    %14 = vector.shape_cast %13 : vector<1xf32> to vector<1x1xf32>
    %cst_7 = arith.constant 0.000000e+00 : f32
    %15 = vector.broadcast %cst_7 : f32 to vector<1x1xf32>
    %16 = arith.subf %15, %14 : vector<1x1xf32>
    %cst_8 = arith.constant 0.000000e+00 : f32
    %17 = vector.broadcast %cst_8 : f32 to vector<1x1xf32>
    %18 = arith.minimumf %16, %17 : vector<1x1xf32>
    %19 = math.absf %16 : vector<1x1xf32>
    %cst_9 = arith.constant 0.000000e+00 : f32
    %20 = vector.broadcast %cst_9 : f32 to vector<1x1xf32>
    %21 = arith.subf %20, %19 : vector<1x1xf32>
    %22 = math.exp %21 : vector<1x1xf32>
    %23 = math.log1p %22 : vector<1x1xf32>
    %24 = arith.subf %18, %23 : vector<1x1xf32>
    %c0_10 = arith.constant 0 : index
    %c0_11 = arith.constant 0 : index
    %25 = vector.load %arg8[%c0_10, %c0_11] : memref<1x1xf32, #tpu.memory_space<vmem>>, vector<1x1xf32>
    %26 = arith.addf %25, %24 : vector<1x1xf32>
    %c0_12 = arith.constant 0 : index
    %c0_13 = arith.constant 0 : index
    %27 = vector.load %arg8[%c0_12, %c0_13] : memref<1x1xf32, #tpu.memory_space<vmem>>, vector<1x1xf32>
    tpu.vector_store %arg8[%c0_12, %c0_13], %26 {strides = array<i32>} : memref<1x1xf32, #tpu.memory_space<vmem>>, vector<1x1xf32>,
    %c0_i32_14 = arith.constant 0 : i32
    %28 = arith.cmpi eq, %arg1, %c0_i32_14 : i32
    %29 = arith.extui %28 : i1 to i32
    %c0_i32_15 = arith.constant 0 : i32
    %30 = arith.cmpi ne, %29, %c0_i32_15 : i32
    scf.if %30 {
      %c0_17 = arith.constant 0 : index
      %c0_18 = arith.constant 0 : index
      %c0_19 = arith.constant 0 : index
      %33 = vector.load %arg5[%c0_17, %c0_18, %c0_19] : memref<1x1x32xf32, #tpu.memory_space<vmem>>, vector<1x1x32xf32>
      %34 = vector.shape_cast %33 : vector<1x1x32xf32> to vector<1x32xf32>
      %35 = arith.mulf %34, %9 : vector<1x32xf32>
      %cst_20 = arith.constant dense<0.000000e+00> : vector<1xf32>
      %36 = vector.multi_reduction <add>, %35, %cst_20 [1] : vector<1x32xf32> to vector<1xf32>
      %37 = vector.shape_cast %36 : vector<1xf32> to vector<1x1xf32>
      %cst_21 = arith.constant 0.000000e+00 : f32
      %38 = vector.broadcast %cst_21 : f32 to vector<1x1xf32>
      %39 = arith.subf %38, %37 : vector<1x1xf32>
      %40 = math.exp %39 : vector<1x1xf32>
      %cst_22 = arith.constant 1.000000e+00 : f32
      %41 = vector.broadcast %cst_22 : f32 to vector<1x1xf32>
      %42 = arith.addf %41, %40 : vector<1x1xf32>
      %43 = tpu.reciprocal %42 : vector<1x1xf32> -> vector<1x1xf32>
      %c0_23 = arith.constant 0 : index
      %c0_24 = arith.constant 0 : index
      %44 = vector.load %arg8[%c0_23, %c0_24] : memref<1x1xf32, #tpu.memory_space<vmem>>, vector<1x1xf32>
      %45 = arith.addf %44, %43 : vector<1x1xf32>
      %c0_25 = arith.constant 0 : index
      %c0_26 = arith.constant 0 : index
      %46 = vector.load %arg8[%c0_25, %c0_26] : memref<1x1xf32, #tpu.memory_space<vmem>>, vector<1x1xf32>
      tpu.vector_store %arg8[%c0_25, %c0_26], %45 {strides = array<i32>} : memref<1x1xf32, #tpu.memory_space<vmem>>, vector<1x1xf32>,
    } else {
    }
    %31 = arith.extui %5 : i1 to i32
    %c0_i32_16 = arith.constant 0 : i32
    %32 = arith.cmpi ne, %31, %c0_i32_16 : i32
    scf.if %32 {
      %c0_17 = arith.constant 0 : index
      %c0_18 = arith.constant 0 : index
      %33 = vector.load %arg8[%c0_17, %c0_18] : memref<1x1xf32, #tpu.memory_space<vmem>>, vector<1x1xf32>
      %cst_19 = arith.constant -1.250000e-01 : f32
      %34 = vector.broadcast %cst_19 : f32 to vector<1x1xf32>
      %35 = arith.mulf %33, %34 : vector<1x1xf32>
      %c0_20 = arith.constant 0 : index
      %c0_21 = arith.constant 0 : index
      %36 = vector.load %arg8[%c0_20, %c0_21] : memref<1x1xf32, #tpu.memory_space<vmem>>, vector<1x1xf32>
      tpu.vector_store %arg8[%c0_20, %c0_21], %35 {strides = array<i32>} : memref<1x1xf32, #tpu.memory_space<vmem>>, vector<1x1xf32>,
    } else {
    }
    return
  }
  func.func @transform_0(%arg0: i32, %arg1: i32, %arg2: memref<8xi32, #tpu.memory_space<smem>>, %arg3: memref<8xi32, #tpu.memory_space<smem>>, %arg4: memref<8x5xi32, #tpu.memory_space<smem>>) -> (i32, i32, i32) {
    %0 = arith.index_cast %arg0 : i32 to index
    %1 = memref.load %arg2[%0] : memref<8xi32, #tpu.memory_space<smem>>
    %c0_i32 = arith.constant 0 : i32
    %c0_i32_0 = arith.constant 0 : i32
    %c0_i32_1 = arith.constant 0 : i32
    return %1, %c0_i32, %c0_i32_0 : i32, i32, i32
  }
  func.func @transform_1(%arg0: i32, %arg1: i32, %arg2: memref<8xi32, #tpu.memory_space<smem>>, %arg3: memref<8xi32, #tpu.memory_space<smem>>, %arg4: memref<8x5xi32, #tpu.memory_space<smem>>) -> (i32, i32, i32) {
    %0 = arith.index_cast %arg0 : i32 to index
    %1 = memref.load %arg3[%0] : memref<8xi32, #tpu.memory_space<smem>>
    %c0_i32 = arith.constant 0 : i32
    %c0_i32_0 = arith.constant 0 : i32
    %c0_i32_1 = arith.constant 0 : i32
    return %1, %c0_i32, %c0_i32_0 : i32, i32, i32
  }
  func.func @transform_2(%arg0: i32, %arg1: i32, %arg2: memref<8xi32, #tpu.memory_space<smem>>, %arg3: memref<8xi32, #tpu.memory_space<smem>>, %arg4: memref<8x5xi32, #tpu.memory_space<smem>>) -> (i32, i32, i32) {
    %0 = arith.index_cast %arg0 : i32 to index
    %1 = arith.index_cast %arg1 : i32 to index
    %2 = memref.load %arg4[%0, %1] : memref<8x5xi32, #tpu.memory_space<smem>>
    %c0_i32 = arith.constant 0 : i32
    %c0_i32_0 = arith.constant 0 : i32
    %c0_i32_1 = arith.constant 0 : i32
    return %2, %c0_i32, %c0_i32_0 : i32, i32, i32
  }
  func.func @transform_3(%arg0: i32, %arg1: i32, %arg2: memref<8xi32, #tpu.memory_space<smem>>, %arg3: memref<8xi32, #tpu.memory_space<smem>>, %arg4: memref<8x5xi32, #tpu.memory_space<smem>>) -> (i32, i32) {
    %c0_i32 = arith.constant 0 : i32
    %c0_i32_0 = arith.constant 0 : i32
    %c0_i32_1 = arith.constant 0 : i32
    return %c0_i32, %c0_i32_0 : i32, i32
  }
}

</mosaic_0001>

<bundles_post_ra>
// kernel: tpu_custom_call.1
= control target key start
LH: loop header
LB: loop body
LE: loop exit
PB: predicated region body
PF: predicated region fallthrough
CT: control target
= control target key end

     0   :  { %s755_s0 = inlined_call_operand.vmem [shape: s32[8], index: 0, kind: input, shape index: {}]   ;;  %s756_s3 = inlined_call_operand.vmem [shape: f32[64,1,32], index: 3, kind: input, shape index: {}]   ;;  %s757_s4 = inlined_call_operand.vmem [shape: f32[64,1,32], index: 4, kind: input, shape index: {}]   ;;  %s758_s5 = inlined_call_operand.vmem [shape: f32[64,1,32], index: 5, kind: input, shape index: {}]   ;;  %s759_s6 = inlined_call_operand.hbm [shape: f32[1,1], index: 6, kind: output, shape index: {}]   ;;  %s760_s1 = inlined_call_operand.vmem [shape: s32[8], index: 1, kind: input, shape index: {}]   ;;  %s761_s2 = inlined_call_operand.vmem [shape: s32[8,5], index: 2, kind: input, shape index: {}]  }
   0x1   :  { %s11_s23 = sshll.u32 %s755_s0, 4  ;;  %s15_s26 = sshll.u32 %s760_s1, 4  ;;  %s12_s23 = int_to_ptr.vmem [resolvable:$true] %s11_s23  ;;  %s16_s26 = int_to_ptr.vmem [resolvable:$true] %s15_s26 }
   0x2   :  { %s482_s27 = scalar_lea.vmem %s12_s23, 16  ;;  %p487_p1 = scmp.lt.s32.totalorder %s12_s23, %s12_s23 }
   0x3   :  { %p483_p0 = scmp.ne.s32.totalorder %s12_s23, %s482_s27  ;;  %p488_p2 = scmp.lt.s32.totalorder %s482_s27, %s482_s27 }
   0x5   :  { %p489_p3 = por %p488_p2, %p487_p1 }
   0x7   :  { %p490_p4 = pnand %p489_p3, %p483_p0 }
   0x9   :  { %493 = shalt.err (!%p490_p4)  }
   0xa   :  { %s590_s28 = smov [#allocation3]   ;;  %s494_s29 = scalar_lea.vmem %s16_s26, 16 }
   0xb   :  { %14 = dma.vmem_to_smem %s12_s23, 16, %s590_s28, [#allocation2] }
   0xc   :  { %p495_p5 = scmp.ne.s32.totalorder %s16_s26, %s494_s29  ;;  %p499_p6 = scmp.lt.s32.totalorder %s16_s26, %s16_s26 }
   0xd   :  { %p500_p7 = scmp.lt.s32.totalorder %s494_s29, %s494_s29 }
   0xf   :  { %p501_p8 = por %p500_p7, %p499_p6 }
  0x11   :  { %p502_p9 = pnand %p501_p8, %p495_p5 }
  0x13   :  { %505 = shalt.err (!%p502_p9)  }
  0x14   :  { %s591_s0 = smov [#allocation4]   ;;  %s19_s7 = sshll.u32 %s761_s2, 4  ;;  %s20_s7 = int_to_ptr.vmem [resolvable:$true] %s19_s7 }
  0x15   :  { %18 = dma.vmem_to_smem %s16_s26, 16, %s591_s0, [#allocation2] }
  0x16   :  { %s506_s8 = scalar_lea.vmem %s20_s7, 128  ;;  %p511_p11 = scmp.lt.s32.totalorder %s20_s7, %s20_s7 }
  0x17   :  { %p507_p10 = scmp.ne.s32.totalorder %s20_s7, %s506_s8  ;;  %p512_p12 = scmp.lt.s32.totalorder %s506_s8, %s506_s8 }
  0x19   :  { %p513_p13 = por %p512_p12, %p511_p11 }
  0x1b   :  { %p514_p0 = pnand %p513_p13, %p507_p10 }
  0x1d   :  { %517 = shalt.err (!%p514_p0)  }
  0x1e   :  { %s592_s9 = smov [#allocation5]  }
  0x1f   :  { %22 = dma.vmem_to_smem %s20_s7, 128, %s592_s9, [#allocation2] }
  0x20   :  { %564 = dma.done.wait [#allocation2], 160 }
  0x21   :  { %565 = vsyncadd [#allocation2], 4294967136 }
  0x22   :  { %24 = sfence }
  0x23   :  { %25 = vsyncpa [#allocation7], 0  ;;  %s639_s10 = smov 0   ;;  %s641_s11 = smov 0  }
  0x24   :  { %s643_s12 = smov 0   ;;  %s645_s2 = smov 0  }
  0x25   :  { %s647_s13 = smov 0  }
  0x26 LB: > { %s411_s14 = sadd.s32 4294967295, %s588_s13   ;;  %s40_s15 = sadd.s32 1, %s580_s12  ;;  %s588_s13 = sphi %s647_s13, %s31_s13   ;;  %s584_s2 = sphi %s645_s2, %s767_s2   ;;  %s580_s12 = sphi %s643_s12, %s766_s12   ;;  %s576_s11 = sphi %s641_s11, %s765_s11   ;;  %s572_s10 = sphi %s639_s10, %s764_s10  }
  0x27   : > { %p41_p1 = scmp.ge.s32.totalorder %s40_s15, 5  ;;  %s43_s16 = sadd.s32 1, %s584_s2 }
  0x28   : > { %p416_p2 = scmp.ge.s32.totalorder %s588_s13, 1  ;;  %p216_p3 = scmp.lt.s32.totalorder %s588_s13, 41 }
  0x29   : > { %s769_s15 = smov (%p41_p1, %s40_s15), 0  ;;  %s771_s16 = smov (!%p41_p1, %s43_s16), %s584_s2 }
  0x2a   : > { %p217_p4 = pnand %p416_p2, %p216_p3  ;;  %p45_p5 = scmp.ge.s32.totalorder %s771_s16, 8 }
  0x2b   : > { %s249_s17 = sld [smem:[#allocation3 + %s576_s11]] (!%p217_p4)  ;;  %s259_s19 = sshra.s32 (!%p217_p4), %s572_s10, 7 }
  0x2c   : > { %s773_s16 = smov (%p45_p5, %s771_s16), 0  ;;  %220 = sbr.rel (%p217_p4) target bundleno = 293 (0x125), region = 32 }
  0x2d   : > { %s254_s18 = sld [smem:[#allocation4 + %s576_s11]] (!%p217_p4)  ;;  %s264_s20 = sand.u32 (!%p217_p4), 127, %s572_s10 }
  0x2e   : > { %s261_s21 = sadd.s32 (!%p217_p4), %s576_s11, %s259_s19  ;;  %p278_p6 = scmp.eq.s32.totalorder (!%p217_p4), %s576_s11, 0 }
  0x2f   : > { %s417_s22 = sshll.u32 (!%p217_p4), %s261_s21, 7  ;;  %p279_p7 = scmp.eq.s32.totalorder (!%p217_p4), %s572_s10, 0 }
  0x30   : > { %s265_s23 = sadd.s32 (!%p217_p4), %s417_s22, %s264_s20  ;;  %p282_p8 = scmp.eq.s32.totalorder (!%p217_p4), %s576_s11, 7 }
  0x31   : > { %s266_s24 = sld [smem:[#allocation5 + %s265_s23]] (!%p217_p4)  ;;  %p280_p9 = pnand (!%p217_p4), %p279_p7, %p278_p6 }
  0x32   : > { %p250_p10 = scmp.lt.s32.totalorder (!%p217_p4), %s249_s17, 63  ;;  %p283_p12 = scmp.eq.s32.totalorder (!%p217_p4), %s572_s10, 4 }
  0x33   : > { %p255_p11 = scmp.lt.s32.totalorder %s254_s18, 63  ;;  %vm288_vm0 = vcmask (!%p280_p9), 0   ;;  %v593_v0 = vmov (!%p280_p9), 0.0  }
  0x34   : > { %s775_s17 = smov (!%p250_p10, %s249_s17), 63  ;;  %p689_p13 = pnand %p283_p12, %p282_p8  ;;  %289 = vst.msk [vmem:[#allocation6] sm:$0x1] (!%p280_p9), %vm288_vm0, %v593_v0 }
  0x35   : > { %s777_s18 = smov (!%p255_p11, %s254_s18), 63  ;;  %s252_s27 = scalar_lea.vmem %s756_s3, %s775_s17 }
  0x36   : > { %s257_s1 = scalar_lea.vmem %s757_s4, %s777_s18  ;;  %287 = sbr.rel (%p280_p9) target bundleno = 61 (0x3d), region = 36 }
  0x37   : > { %p267_p0 = scmp.lt.s32.totalorder %s266_s24, 63 }
  0x39   : > { %s779_s24 = smov (!%p267_p0, %s266_s24), 63 }
  0x3a   : > { %s269_s8 = scalar_lea.vmem %s758_s5, %s779_s24 }
  0x3d PF: > { %v290_v1 = vld [vmem:[%s257_s1] sm:$0x1]  ;;  %vm293_vm1 = vcmask 253952   ;;  %vm315_vm3 = vcmask 0   ;;  %p418_p1 = scmp.ne.s32.totalorder %s572_s10, 0 }
  0x3e   : > { %v291_v2 = vld [vmem:[%s269_s8] sm:$0x1] }
  0x3f   : > { %v292_v3 = vmul.f32 %v291_v2, %v290_v1  ;;  %v313_v20 = vld [vmem:[#allocation6] sm:$0x1] }
  0x40   : > { %v320_v23 = vld [vmem:[%s252_s27] sm:$0x1] (!%p418_p1) }
  0x41   : > { %v294_v4 = vsel %vm293_vm1, %v292_v3, 0.0  ;;  %v321_v24 = vmul.f32 (!%p418_p1), %v320_v23, %v290_v1 }
  0x42   : > { %295 = vadd.xlane.f32.xlu0 %v294_v4 }
  0x43   : > { %v322_v25 = vsel (!%p418_p1), %vm293_vm1, %v321_v24, 0.0 }
  0x46   : > { %323 = vadd.xlane.f32.xlu0 (!%p418_p1), %v322_v25 }
  0xcf   : > { %v296_v5 = vpop.xlane.xlu0 %295 }
  0xd0   : > { %v297_v6 = vsub.f32 0.0, %v296_v5 }
  0xd2   : > { %v299_v7 = vand.u32 2147483647, %v297_v6  ;;  %v298_v18 = vmin.f32 %v297_v6, 0.0 }
  0xd3   : > { %v324_v26 = vpop.xlane.xlu0 (!%p418_p1), %323 }
  0xd4   : > { %v300_v8 = vsub.f32 0.0, %v299_v7  ;;  %v325_v27 = vsub.f32 (!%p418_p1), 0.0, %v324_v26 }
  0xd6   : > { %v301_v9 = vmul.f32 1.442695, %v300_v8  ;;  %v326_v28 = vmul.f32 (!%p418_p1), 1.442695, %v325_v27 }
  0xd8   : > { %474 = vpow2.f32 %v301_v9 }
  0xe2   : > { %v475_v10 = vpop.eup %474 }
  0xe3   : > { %v303_v11 = vadd.f32 1.0, %v475_v10  ;;  %v306_v12 = vmul.f32 -0.5, %v475_v10  ;;  %v309_v14 = vand.u32 2147483647, %v475_v10 }
  0xe5   : > { %476 = vlog2.f32 %v303_v11  ;;  %v307_v13 = vadd.f32 1.0, %v306_v12  ;;  %vm310_vm2 = vcmp.lt.f32.partialorder %v309_v14, 0.0004427343 }
  0xe6   : > { %478 = vpow2.f32 (!%p418_p1), %v326_v28 }
  0xe7   : > { %v308_v17 = vmul.f32 %v475_v10, %v307_v13 }
  0xef   : > { %v477_v15 = vpop.eup %476 }
  0xf0   : > { %v305_v16 = vmul.f32 0.6931472, %v477_v15  ;;  %v479_v29 = vpop.eup (!%p418_p1), %478 }
  0xf1   : > { %319 = sbr.rel (%p418_p1) target bundleno = 258 (0x102), region = 40  ;;  %v328_v30 = vadd.f32 (!%p418_p1), 1.0, %v479_v29 }
  0xf2   : > { %v311_v19 = vsel %vm310_vm2, %v308_v17, %v305_v16 }
  0xf3   : > { %v312_v21 = vsub.f32 %v298_v18, %v311_v19  ;;  %480 = vrcp.f32 (!%p418_p1), %v328_v30 }
  0xf5   : > { %v314_v22 = vadd.f32 %v313_v20, %v312_v21 }
  0xf7   : > { %316 = vst.msk [vmem:[#allocation6] sm:$0x1] %vm315_vm3, %v314_v22 }
  0xfd   : > { %v481_v32 = vpop.eup %480 }
  0xfe   : > { %v330_v31 = vld [vmem:[#allocation6] sm:$0x1] }
  0xff   : > { %v331_v33 = vadd.f32 %v481_v32, %v330_v31 }
 0x101   : > { %332 = vst.msk [vmem:[#allocation6] sm:$0x1] %vm315_vm3, %v331_v33 }
 0x102 PF: > { %334 = sbr.rel (%p689_p13) target bundleno = 268 (0x10c), region = 44 }
 0x108   : > { %v335_v34 = vld [vmem:[#allocation6] sm:$0x1] (!%p689_p13) }
 0x109   : > { %v336_v35 = vmul.f32 -0.125, %v335_v34 }
 0x10b   : > { %337 = vst.msk [vmem:[#allocation6] sm:$0x1] %vm315_vm3, %v336_v35 }
 0x10c PF: > { %p714_p2 = scmp.eq.s32.totalorder %s411_s14, 39  ;;  %s594_s17 = smov [#allocation6]  }
 0x10d   : > { %s345_s18 = sshll.u32 %s594_s17, 4  ;;  %s346_s18 = int_to_ptr.vmem [resolvable:$true] %s345_s18 }
 0x10e   : > { %s518_s19 = scalar_lea.vmem %s346_s18, 16  ;;  %s524_s20 = scalar_lea.vmem %s346_s18, 32 }
 0x10f   : > { %p519_p3 = scmp.ne.s32.totalorder %s346_s18, %s518_s19  ;;  %p525_p6 = scmp.lt.s32.totalorder %s346_s18, %s346_s18 }
 0x110   : > { %p526_p7 = scmp.lt.s32.totalorder %s524_s20, %s518_s19 }
 0x111   : > { %p520_p4 = pnand %p519_p3, %p714_p2 }
 0x112   : > { %p527_p8 = por %p526_p7, %p525_p6 }
 0x113   : > { %p521_p5 = pneg %p520_p4 }
 0x115   : > { %p528_p9 = pnand %p527_p8, %p521_p5 }
 0x117   : > { %531 = shalt.err (!%p528_p9)
}
 0x118   : > { %s532_s22 = scalar_lea.hbm %s759_s6, 16 }
 0x119   : > { %p533_p10 = scmp.ne.s32.totalorder %s759_s6, %s532_s22  ;;  %p538_p13 = scmp.lt.u32.totalorder %s532_s22, %s759_s6 }
 0x11b   : > { %p534_p11 = pnand %p533_p10, %p714_p2 }
 0x11d   : > { %p535_p12 = pneg %p534_p11 }
 0x11f   : > { %p540_p0 = pnand %p538_p13, %p535_p12 }
 0x121   : > { %543 = shalt.err (!%p540_p0)
}
 0x122   : > { %424 = dma.vmem_to_hbm [thread:$0]  (%p714_p2), %s346_s18, 16, %s759_s6, [#allocation7]  }
 0x123   : > { %567 = dma.done.wait (%p714_p2), [#allocation7], 16  }
 0x124   : > { %569 = vsyncadd (%p714_p2), [#allocation7], 4294967280 }
 0x125 PF: > { %s31_s13 = sadd.s32 1, %s588_s13   ;;  %s764_s10 = smov %s580_s12 }
 0x126   : > { %p28_p1 = scmp.ge.s32.totalorder %s31_s13, 42   ;;  %s765_s11 = smov %s584_s2 }
 0x127   : > { %s766_s12 = smov %s769_s15  ;;  %s767_s2 = smov %s773_s16 }
 0x128   :  { %30 = sbr.rel (!%p28_p1) target bundleno = 38 (0x26), region = 77 }
 0x12f   :  { %358 = vsyncpa [#allocation7], 1 }
 0x130   :  { %360 = vsyncpa [#allocation7 + $0x1], 1 }

</bundles_post_ra>
